<compile_context>
chip_gen: v5e
topology: v5e:2x2
jax: 0.10.0
libtpu: 0.0.40
codegen_flags: <defaults>
</compile_context>

<pallas_src>
import functools

import numpy as np
import jax
import jax.numpy as jnp
from jax import lax
from jax.experimental import pallas as pl
from jax.experimental.pallas import tpu as pltpu


# ----------------------------------------------------------------------------
# Host-side bilinear interpolation matrices (numpy, cached per shape).
# ----------------------------------------------------------------------------
def _bilinear_matrix_np(out_size: int, in_size: int) -> np.ndarray:
    """M (out_size, in_size) with up = M @ signal.

    Matches PyTorch F.interpolate(mode='bilinear', align_corners=False).
    """
    scale = in_size / out_size
    dst = np.arange(out_size, dtype=np.float64)
    src = (dst + 0.5) * scale - 0.5
    src = np.maximum(src, 0.0)                       # PyTorch clamps negative src to 0
    i0 = np.clip(np.floor(src).astype(np.int64), 0, in_size - 1)
    i1 = np.minimum(i0 + 1, in_size - 1)
    w1 = src - i0
    w0 = 1.0 - w1
    m = np.zeros((out_size, in_size), dtype=np.float64)
    m[np.arange(out_size), i0] += w0
    m[np.arange(out_size), i1] += w1
    return m.astype(np.float32)


@functools.lru_cache(maxsize=None)
def _resize_weights(xh: int, xw: int, gh: int, gw: int):
    rh = _bilinear_matrix_np(xh, gh)                                  # (Hx, Hg)
    rwt = np.ascontiguousarray(_bilinear_matrix_np(xw, gw).T)         # (Wg, Wx)
    return jnp.asarray(rh), jnp.asarray(rwt)


# ----------------------------------------------------------------------------
# Hardware queries (defensive: fall back to conservative defaults).
# ----------------------------------------------------------------------------
def _tpu_info():
    try:
        return pltpu.get_tpu_info()
    except Exception:
        return None


def _tpu_vmem_bytes() -> int:
    info = _tpu_info()
    if info is not None:
        for name in ("vmem_capacity_bytes", "vmem_size_bytes", "vmem_bytes"):
            v = getattr(info, name, None)
            try:
                if v is not None and int(v) > 0:
                    return int(v)
            except (TypeError, ValueError):
                pass
    return 64 << 20  # conservative default: v7x per-core VMEM


def _num_tensorcores() -> int:
    info = _tpu_info()
    if info is not None:
        for name in ("num_cores", "num_tensorcores", "tensorcores_per_chip", "core_count"):
            v = getattr(info, name, None)
            try:
                if v is not None and int(v) > 0:
                    return int(v)
            except (TypeError, ValueError):
                pass
    return 1  # single-TC default (v5e / v6e): no forced grid split


def _round_up(v: int, m: int) -> int:
    return (v + m - 1) // m * m


def _pick_block_channels(nc, per_chan_bytes, budget_bytes, sub, ncores, tc_max):
    """Channel-block size: as large as the VMEM budget allows, dtype-sublane
    aligned, split across TensorCores only when the chip has more than one."""
    cap = max(sub, budget_bytes // max(per_chan_bytes, 1))
    if tc_max is not None:
        cap = min(cap, max(int(tc_max), 1))
    cap = max(sub, cap // sub * sub)
    cap = min(cap, _round_up(nc, sub))
    nblocks = pl.cdiv(nc, cap)
    if ncores > 1 and nc > sub:
        nblocks = _round_up(nblocks, ncores)      # keep both cores busy (v7x-class)
    tc = _round_up(pl.cdiv(nc, nblocks), sub)
    return min(tc, _round_up(nc, sub))


# ----------------------------------------------------------------------------
# Kernels
# ----------------------------------------------------------------------------
def _fuse_resize_kernel(x_ref, g_ref, rwt_ref, rh_ref, o_ref):
    # x_ref : (TC, Hx, Wx)     feature-map block
    # g_ref : (TC*Hg, Wg)      guidance block (channels*rows on sublanes)
    # rwt_ref: (Wg, Wx)  f32   column (W) interpolation matrix, pre-transposed
    # rh_ref : (Hx, Hg)  f32   row (H) interpolation matrix
    # o_ref : (TC, Hx, Wx)
    tc, hx, wx = x_ref.shape
    hg = g_ref.shape[0] // tc

    g = g_ref[...].astype(jnp.float32)
    # Separable resize, step 1 (W): one 2-D MXU matmul, M = TC*Hg, K = Wg, N = Wx.
    t = jnp.dot(g, rwt_ref[...], preferred_element_type=jnp.float32)      # (TC*Hg, Wx)
    t = t.reshape(tc, hg, wx)                                             # leading-dim split only

    # Step 2 (H): canonical batched matmul over the channel block.
    rh_b = jnp.broadcast_to(rh_ref[...], (tc, hx, hg))                    # (TC, Hx, Hg)
    g_up = lax.dot_general(
        rh_b, t,
        dimension_numbers=(((2,), (1,)), ((0,), (0,))),
        preferred_element_type=jnp.float32)                               # (TC, Hx, Wx)

    out = x_ref[...].astype(jnp.float32) + (-0.01) * g_up
    o_ref[...] = out.astype(o_ref.dtype)


def _fuse_same_kernel(x_ref, g_ref, o_ref):
    # Identity fast path: no resize, pure VPU scale-add (f32 accumulation).
    out = x_ref[...].astype(jnp.float32) + (-0.01) * g_ref[...].astype(jnp.float32)
    o_ref[...] = out.astype(o_ref.dtype)


# ----------------------------------------------------------------------------
# Wrapper
# ----------------------------------------------------------------------------
def feature_fusion_block(x: jnp.ndarray, g: jnp.ndarray, beta: jnp.ndarray,
                         *, tc_max: int | None = None) -> jnp.ndarray:
    """x: (N, C, Hx, Wx), g: (N, C, Hg, Wg) -> (N, C, Hx, Wx)."""
    n, c, xh, xw = x.shape
    gn, gc, gh, gw = g.shape
    assert (n, c) == (gn, gc)
    del beta  # nn.Parameter exists in __init__ but is unused in forward.
    # TODO(synk): self.transform is None in this configuration; nothing applied.

    nc = n * c
    xs = xh * xw
    gs = gh * gw
    out_dtype = x.dtype
    itemsize = jnp.dtype(out_dtype).itemsize
    sub = max(8, 32 // itemsize)          # sublane multiple: 8 f32 / 16 bf16 / 32 int8
    same = (xh == gh) and (xw == gw)

    vmem_cap = _tpu_vmem_bytes()
    ncores = _num_tensorcores()
    vmem_limit = int(vmem_cap * 0.9)

    if same:
        # Equal-size fast path: lane-dense 2-D slabs (NC, Hx*Wx), VPU only.
        x2 = x.reshape(nc, xs)
        g2 = g.reshape(nc, xs)
        per_chan = 2 * 3 * xs * itemsize + 2 * xs * 4      # dbl-buffered x/g/out + f32 temps
        tc = _pick_block_channels(nc, per_chan, int(vmem_cap * 0.45), sub, ncores, tc_max)
        out2 = pl.pallas_call(
            _fuse_same_kernel,
            out_shape=jax.ShapeDtypeStruct((nc, xs), out_dtype),
            grid=(pl.cdiv(nc, tc),),
            in_specs=[pl.BlockSpec((tc, xs), lambda i: (i, 0)),
                      pl.BlockSpec((tc, xs), lambda i: (i, 0))],
            out_specs=pl.BlockSpec((tc, xs), lambda i: (i, 0)),
            compiler_params=pltpu.CompilerParams(
                dimension_semantics=("parallel",),
                vmem_limit_bytes=vmem_limit),
        )(x2, g2)
        return out2.reshape(n, c, xh, xw)

    # Resize path: separable bilinear weights, tiny and resident.
    rh, rwt = _resize_weights(xh, xw, gh, gw)
    x3 = x.reshape(nc, xh, xw)            # contiguous (free) reshape
    g2 = g.reshape(nc * gh, gw)           # contiguous (free) reshape

    # Per-channel VMEM: double-buffered x/g/out blocks + in-kernel f32 temps
    # (x upcast, g_up, out, W-resize intermediate, broadcast rh, g upcast).
    per_chan = (2 * (2 * xs + gs) * itemsize
                + (3 * xs + gh * xw + xh * gh + gs) * 4)
    tc = _pick_block_channels(nc, per_chan, int(vmem_cap * 0.40), sub, ncores, tc_max)

    out3 = pl.pallas_call(
        _fuse_resize_kernel,
        out_shape=jax.ShapeDtypeStruct((nc, xh, xw), out_dtype),
        grid=(pl.cdiv(nc, tc),),
        in_specs=[pl.BlockSpec((tc, xh, xw), lambda i: (i, 0, 0)),
                  pl.BlockSpec((tc * gh, gw), lambda i: (i, 0)),
                  pl.BlockSpec((gw, xw), lambda i: (0, 0)),       # W-resize weights
                  pl.BlockSpec((xh, gh), lambda i: (0, 0))],      # H-resize weights
        out_specs=pl.BlockSpec((tc, xh, xw), lambda i: (i, 0, 0)),
        compiler_params=pltpu.CompilerParams(
            dimension_semantics=("parallel",),
            vmem_limit_bytes=vmem_limit),
    )(x3, g2, rwt, rh)
    return out3.reshape(n, c, xh, xw)


# ----------------------------------------------------------------------------
# Pure-JAX reference of the forward pass (bilinear resize + scaled add).
# ----------------------------------------------------------------------------
def _reference(x, g):
    _, _, xh, xw = x.shape
    _, _, gh, gw = g.shape
    xf = x.astype(jnp.float32)
    gf = g.astype(jnp.float32)
    if (xh, xw) == (gh, gw):
        return (xf + (-0.01) * gf).astype(x.dtype)
    rh = jnp.asarray(_bilinear_matrix_np(xh, gh))
    rw = jnp.asarray(_bilinear_matrix_np(xw, gw))
    g_up = jnp.einsum('ih,nchw,jw->ncij', rh, gf, rw)
    return (xf + (-0.01) * g_up).astype(x.dtype)


if __name__ == "__main__":
    key = jax.random.PRNGKey(0)
    kx, kg, kh = jax.random.split(key, 3)

    # Deterministic parameter init (module defines beta = 0.0; unused in forward).
    beta = jnp.zeros((), dtype=jnp.float32)

    # 1) Bilinear-upsample path: g (8x8) resized to x's (16x16).
    x = jax.random.normal(kx, (2, 4, 16, 16), dtype=jnp.float32)
    g = jax.random.normal(kg, (2, 4, 8, 8), dtype=jnp.float32)
    out = jax.block_until_ready(feature_fusion_block(x, g, beta))
    assert out.shape == (2, 4, 16, 16)
    assert jnp.allclose(out, _reference(x, g), atol=1e-5, rtol=1e-5), "resize mismatch"

    # 2) Equal-size fast path (no resize; pure scale-add).
    g_same = jax.random.normal(kh, (2, 4, 16, 16), dtype=jnp.float32)
    out_same = jax.block_until_ready(feature_fusion_block(x, g_same, beta))
    assert jnp.allclose(out_same, x + (-0.01) * g_same, atol=1e-5, rtol=1e-5), \
        "same-size mismatch"

    # 3) Multi-block grid (forced small channel block) to exercise index maps.
    x3 = jax.random.normal(kx, (2, 8, 16, 16), dtype=jnp.float32)
    g3 = jax.random.normal(kg, (2, 8, 8, 8), dtype=jnp.float32)
    out3 = jax.block_until_ready(feature_fusion_block(x3, g3, beta, tc_max=8))
    assert jnp.allclose(out3, _reference(x3, g3), atol=1e-5, rtol=1e-5), \
        "multi-block mismatch"

    print("KERNEL_OK")
</pallas_src>

<mosaic_0001>
module attributes {stable_mosaic.version = 11 : i64} {
  func.func @_fuse_resize_kernel(%arg0: i32, %arg1: memref<8x16x16xf32, #tpu.memory_space<vmem>>, %arg2: memref<64x8xf32, #tpu.memory_space<vmem>>, %arg3: memref<8x16xf32, #tpu.memory_space<vmem>>, %arg4: memref<16x8xf32, #tpu.memory_space<vmem>>, %arg5: memref<8x16x16xf32, #tpu.memory_space<vmem>>) attributes {dimension_semantics = [#tpu.dimension_semantics<parallel>], iteration_bounds = array<i64: 1>, scalar_prefetch = 0 : i64, scratch_operands = 0 : i64, tpu.core_type = #tpu.core_type<tc>, window_params = [{transform_indices = @transform_0, window_bounds = array<i64: 8, 16, 16>}, {transform_indices = @transform_1, window_bounds = array<i64: 64, 8>}, {pipeline_mode = #tpu.pipeline_mode<synchronous>, transform_indices = @transform_2, window_bounds = array<i64: 8, 16>}, {pipeline_mode = #tpu.pipeline_mode<synchronous>, transform_indices = @transform_3, window_bounds = array<i64: 16, 8>}, {transform_indices = @transform_4, window_bounds = array<i64: 8, 16, 16>}]} {
    %c0 = arith.constant 0 : index
    %c0_0 = arith.constant 0 : index
    %0 = vector.load %arg2[%c0, %c0_0] : memref<64x8xf32, #tpu.memory_space<vmem>>, vector<64x8xf32>
    %c0_1 = arith.constant 0 : index
    %c0_2 = arith.constant 0 : index
    %1 = vector.load %arg3[%c0_1, %c0_2] : memref<8x16xf32, #tpu.memory_space<vmem>>, vector<8x16xf32>
    %cst = arith.constant dense<0.000000e+00> : vector<64x16xf32>
    %2 = tpu.matmul %0, %1, %cst {dimension_numbers = #tpu.dot_dimension_numbers<[1], [0], [0], [1], [0, 0, 1, 1], [], []>} : vector<64x8xf32>, vector<8x16xf32>, vector<64x16xf32> -> vector<64x16xf32>
    %3 = vector.shape_cast %2 : vector<64x16xf32> to vector<8x8x16xf32>
    %c0_3 = arith.constant 0 : index
    %c0_4 = arith.constant 0 : index
    %4 = vector.load %arg4[%c0_3, %c0_4] : memref<16x8xf32, #tpu.memory_space<vmem>>, vector<16x8xf32>
    %5 = vector.shape_cast %4 : vector<16x8xf32> to vector<1x16x8xf32>
    %6 = vector.broadcast %5 : vector<1x16x8xf32> to vector<8x16x8xf32>
    %cst_5 = arith.constant dense<0.000000e+00> : vector<8x16x16xf32>
    %7 = tpu.matmul %6, %3, %cst_5 {dimension_numbers = #tpu.dot_dimension_numbers<[2], [1], [1], [2], [0, 0, 0, 1, 1, 2], [0], [0]>} : vector<8x16x8xf32>, vector<8x8x16xf32>, vector<8x16x16xf32> -> vector<8x16x16xf32>
    %c0_6 = arith.constant 0 : index
    %c0_7 = arith.constant 0 : index
    %c0_8 = arith.constant 0 : index
    %8 = vector.load %arg1[%c0_6, %c0_7, %c0_8] : memref<8x16x16xf32, #tpu.memory_space<vmem>>, vector<8x16x16xf32>
    %cst_9 = arith.constant -0.00999999977 : f32
    %9 = vector.broadcast %cst_9 : f32 to vector<8x16x16xf32>
    %10 = arith.mulf %9, %7 : vector<8x16x16xf32>
    %11 = arith.addf %8, %10 : vector<8x16x16xf32>
    %c0_10 = arith.constant 0 : index
    %c0_11 = arith.constant 0 : index
    %c0_12 = arith.constant 0 : index
    %12 = vector.load %arg5[%c0_10, %c0_11, %c0_12] : memref<8x16x16xf32, #tpu.memory_space<vmem>>, vector<8x16x16xf32>
    tpu.vector_store %arg5[%c0_10, %c0_11, %c0_12], %11 {strides = array<i32>} : memref<8x16x16xf32, #tpu.memory_space<vmem>>, vector<8x16x16xf32>,
    return
  }
  func.func @transform_0(%arg0: i32) -> (i32, i32, i32) {
    %c0_i32 = arith.constant 0 : i32
    %c0_i32_0 = arith.constant 0 : i32
    %c0_i32_1 = arith.constant 0 : i32
    return %arg0, %c0_i32, %c0_i32_0 : i32, i32, i32
  }
  func.func @transform_1(%arg0: i32) -> (i32, i32) {
    %c0_i32 = arith.constant 0 : i32
    %c0_i32_0 = arith.constant 0 : i32
    return %arg0, %c0_i32 : i32, i32
  }
  func.func @transform_2(%arg0: i32) -> (i32, i32) {
    %c0_i32 = arith.constant 0 : i32
    %c0_i32_0 = arith.constant 0 : i32
    %c0_i32_1 = arith.constant 0 : i32
    return %c0_i32, %c0_i32_0 : i32, i32
  }
  func.func @transform_3(%arg0: i32) -> (i32, i32) {
    %c0_i32 = arith.constant 0 : i32
    %c0_i32_0 = arith.constant 0 : i32
    %c0_i32_1 = arith.constant 0 : i32
    return %c0_i32, %c0_i32_0 : i32, i32
  }
  func.func @transform_4(%arg0: i32) -> (i32, i32, i32) {
    %c0_i32 = arith.constant 0 : i32
    %c0_i32_0 = arith.constant 0 : i32
    %c0_i32_1 = arith.constant 0 : i32
    return %arg0, %c0_i32, %c0_i32_0 : i32, i32, i32
  }
}

</mosaic_0001>

<bundles_post_ra>
// kernel: tpu_custom_call.1
= control target key start
LH: loop header
LB: loop body
LE: loop exit
PB: predicated region body
PF: predicated region fallthrough
CT: control target
= control target key end

     0   :  { %9 = vsyncpa [#allocation3], 0  ;;  %s580_s0 = inlined_call_operand.hbm [shape: f32[8,16,16], index: 0, kind: input, shape index: {}]   ;;  %s581_s1 = inlined_call_operand.vmem [shape: f32[64,8], index: 1, kind: input, shape index: {}]   ;;  %s582_s2 = inlined_call_operand.vmem [shape: f32[8,16], index: 2, kind: input, shape index: {}]   ;;  %s583_s3 = inlined_call_operand.vmem [shape: f32[16,8], index: 3, kind: input, shape index: {}]   ;;  %s584_s4 = inlined_call_operand.hbm [shape: f32[8,16,16], index: 4, kind: output, shape index: {}]  }
   0x1   :  { %10 = vsyncpa [#allocation4], 0  ;;  %s15_s17 = sshll.u32 %s580_s0, 4  ;;  %s466_s18 = smov [#allocation2]   ;;  %s16_s17 = int_to_ptr.hbm [resolvable:$true] %s15_s17 }
   0x2   :  { %s17_s19 = sshll.u32 %s466_s18, 4  ;;  %s467_s20 = smov 128   ;;  %s18_s19 = int_to_ptr.vmem [resolvable:$true] %s17_s19 }
   0x3   :  { %s468_s21 = smov 8  }
   0x4   :  { %23 = dma.hbm_to_vmem [thread:$0]  %s16_s17, 2048, %s18_s19, [#allocation3], %s467_s20, %s467_s20, %s468_s21  }
   0x5   :  { %462 = dma.done.wait [#allocation3], 2048  }
   0x6   :  { %463 = vsyncadd [#allocation3], 4294965248  ;;  %vm43_vm0 = vcmask 64512   ;;  %v42_v0 = vld [vmem:[%s582_s2] sm:$0xff]  ;;  %v40_v2 = vld [vmem:[%s581_s1 + $0x30] sm:$0xff]  ;;  %vm349_vm1 = vcmask 130048  }
   0x7   :  { %v34_v1 = vld [vmem:[%s581_s1] sm:$0xff]  ;;  %83 = vmatpush.msra.mxu0 %v42_v0  ;;  %409 = vmatpush.msra.mxu3 %v42_v0  ;;  %v35_v3 = vld [vmem:[%s581_s1 + $0x8] sm:$0xff]  ;;  %v41_v4 = vld [vmem:[%s581_s1 + $0x38] sm:$0xff]  ;;  %s372_s18 = sshll.u32 %s584_s4, 4  ;;  %s373_s18 = int_to_ptr.hbm [resolvable:$true] %s372_s18 }
   0x8   :  { %385 = vmatmul.msk.f32.vlgmr.msra.gmra.mxu0 %vm43_vm0, %v34_v1  ;;  %391 = vmatmul.msk.f32.vlgmr.msra.gmra.mxu3 %vm43_vm0, %v40_v2  ;;  %v36_v5 = vld [vmem:[%s581_s1 + $0x10] sm:$0xff]  ;;  %v37_v6 = vld [vmem:[%s581_s1 + $0x18] sm:$0xff]  ;;  %v38_v7 = vld [vmem:[%s581_s1 + $0x20] sm:$0xff] }
   0x9   :  { %v39_v8 = vld [vmem:[%s581_s1 + $0x28] sm:$0xff]  ;;  %v109_v10 = vld [vmem:[%s583_s3] sm:$0xff]  ;;  %v303_v28 = vld [vmem:[#allocation2 + $0x10] sm:$0xff]  ;;  %s469_s1 = smov [#allocation5]  }
   0xa   :  { %v110_v12 = vld [vmem:[%s583_s3 + $0x8] sm:$0xff]  ;;  %v301_v20 = vld [vmem:[#allocation2] sm:$0xff]  ;;  %v304_v32 = vld [vmem:[#allocation2 + $0x18] sm:$0xff]  ;;  %s370_s3 = sshll.u32 %s469_s1, 4  ;;  %s371_s3 = int_to_ptr.vmem [resolvable:$true] %s370_s3 }
   0xb   :  { %v302_v24 = vld [vmem:[#allocation2 + $0x8] sm:$0xff]  ;;  %v305_v34 = vld [vmem:[#allocation2 + $0x20] sm:$0xff]  ;;  %v307_v40 = vld [vmem:[#allocation2 + $0x30] sm:$0xff] }
   0xc   :  { %v306_v44 = vld [vmem:[#allocation2 + $0x28] sm:$0xff]  ;;  %v308_v48 = vld [vmem:[#allocation2 + $0x38] sm:$0xff]  ;;  %v309_v52 = vld [vmem:[#allocation2 + $0x40] sm:$0xff] }
   0xd   :  { %v313_v56 = vld [vmem:[#allocation2 + $0x60] sm:$0xff]  ;;  %v310_v60 = vld [vmem:[#allocation2 + $0x48] sm:$0xff]  ;;  %v311_v62 = vld [vmem:[#allocation2 + $0x50] sm:$0xff] }
  0x10   :  { %386 = vmatmul.msk.f32.gmra.mxu0 %vm43_vm0, %v35_v3  ;;  %392 = vmatmul.msk.f32.gmra.mxu3 %vm43_vm0, %v41_v4  ;;  %v314_v4 = vld [vmem:[#allocation2 + $0x68] sm:$0xff] }
  0x18   :  { %387 = vmatmul.msk.f32.gmra.mxu0 %vm43_vm0, %v36_v5 }
  0x20   :  { %388 = vmatmul.msk.f32.gmra.mxu0 %vm43_vm0, %v37_v6 }
  0x28   :  { %389 = vmatmul.msk.f32.gmra.mxu0 %vm43_vm0, %v38_v7 }
  0x30   :  { %390 = vmatmul.msk.f32.gmra.mxu0 %vm43_vm0, %v39_v8  ;;  %v315_v8 = vld [vmem:[#allocation2 + $0x70] sm:$0xff] }
  0x85   :  { %v85_v9 = vpop.f32.mrf.mxu0 }
  0x86   :  { %132 = vmatpush.msra.mxu1 %v85_v9 }
  0x87   :  { %393 = vmatmul.msk.f32.vlgmr.msra.gmra.mxu1 %vm43_vm0, %v109_v10 }
  0x8b   :  { %v103_v14 = vpop.f32.mrf.mxu3 }
  0x8d   :  { %v88_v11 = vpop.f32.mrf.mxu0 }
  0x8e   :  { %155 = vmatpush.msra.mxu2 %v88_v11 }
  0x8f   :  { %395 = vmatmul.msk.f32.vlgmr.msra.gmra.mxu2 %vm43_vm0, %v109_v10  ;;  %394 = vmatmul.msk.f32.gmra.mxu1 %vm43_vm0, %v110_v12 }
  0x93   :  { %v106_v17 = vpop.f32.mrf.mxu3 }
  0x95   :  { %v91_v13 = vpop.f32.mrf.mxu0 }
  0x96   :  { %178 = vmatpush.msrb.mxu3 %v91_v13 }
  0x97   :  { %396 = vmatmul.msk.f32.gmra.mxu2 %vm43_vm0, %v110_v12  ;;  %397 = vmatmul.msk.f32.vlgmr.msrb.gmra.mxu3 %vm43_vm0, %v109_v10 }
  0x9d   :  { %v94_v15 = vpop.f32.mrf.mxu0 }
  0x9e   :  { %201 = vmatpush.msrb.mxu1 %v94_v15 }
  0x9f   :  { %398 = vmatmul.msk.f32.gmra.mxu3 %vm43_vm0, %v110_v12  ;;  %399 = vmatmul.msk.f32.vlgmr.msrb.gmra.mxu1 %vm43_vm0, %v109_v10 }
  0xa0   :  { %270 = vmatpush.msra.mxu1 %v103_v14 }
  0xa5   :  { %v97_v16 = vpop.f32.mrf.mxu0 }
  0xa6   :  { %224 = vmatpush.msrb.mxu2 %v97_v16  ;;  %v316_v16 = vld [vmem:[#allocation2 + $0x78] sm:$0xff] }
  0xa7   :  { %401 = vmatmul.msk.f32.vlgmr.msrb.gmra.mxu2 %vm43_vm0, %v109_v10  ;;  %400 = vmatmul.msk.f32.gmra.mxu1 %vm43_vm0, %v110_v12 }
  0xa8   :  { %293 = vmatpush.msra.mxu2 %v106_v17 }
  0xad   :  { %v100_v18 = vpop.f32.mrf.mxu0 }
  0xae   :  { %247 = vmatpush.msra.mxu3 %v100_v18 }
  0xaf   :  { %402 = vmatmul.msk.f32.gmra.mxu2 %vm43_vm0, %v110_v12  ;;  %403 = vmatmul.msk.f32.vlgmr.msra.gmra.mxu3 %vm43_vm0, %v109_v10 }
  0xb0   :  { %405 = vmatmul.msk.f32.vlgmr.msra.gmra.mxu1 %vm43_vm0, %v109_v10 }
  0xb7   :  { %407 = vmatmul.msk.f32.vlgmr.msra.gmra.mxu2 %vm43_vm0, %v109_v10  ;;  %404 = vmatmul.msk.f32.gmra.mxu3 %vm43_vm0, %v110_v12  ;;  %v312_v10 = vld [vmem:[#allocation2 + $0x58] sm:$0xff] }
  0xb8   :  { %406 = vmatmul.msk.f32.gmra.mxu1 %vm43_vm0, %v110_v12 }
  0xbf   :  { %408 = vmatmul.msk.f32.gmra.mxu2 %vm43_vm0, %v110_v12 }
 0x104   :  { %v134_v19 = vpop.f32.mrf.mxu1 }
 0x105   :  { %v317_v21 = vmul.f32 -0.01, %v134_v19 }
 0x107   :  { %v333_v22 = vadd.f32 %v317_v21, %v301_v20 }
 0x109   :  { %350 = vst.msk [vmem:[#allocation5] sm:$0xff] %vm349_vm1, %v333_v22 }
 0x10c   :  { %v137_v23 = vpop.f32.mrf.mxu1 }
 0x10d   :  { %v318_v25 = vmul.f32 -0.01, %v137_v23 }
 0x10f   :  { %v334_v26 = vadd.f32 %v318_v25, %v302_v24 }
 0x111   :  { %351 = vst.msk [vmem:[#allocation5 + $0x8] sm:$0xff] %vm349_vm1, %v334_v26 }
 0x112   :  { %v157_v27 = vpop.f32.mrf.mxu2 }
 0x113   :  { %v319_v29 = vmul.f32 -0.01, %v157_v27 }
 0x115   :  { %v335_v30 = vadd.f32 %v319_v29, %v303_v28 }
 0x117   :  { %352 = vst.msk [vmem:[#allocation5 + $0x10] sm:$0xff] %vm349_vm1, %v335_v30 }
 0x11a   :  { %v160_v31 = vpop.f32.mrf.mxu2  ;;  %v180_v33 = vpop.f32.mrf.mxu3 }
 0x11b   :  { %v320_v35 = vmul.f32 -0.01, %v160_v31  ;;  %v321_v36 = vmul.f32 -0.01, %v180_v33 }
 0x11c   :  { %v203_v39 = vpop.f32.mrf.mxu1 }
 0x11d   :  { %v336_v37 = vadd.f32 %v320_v35, %v304_v32  ;;  %v337_v38 = vadd.f32 %v321_v36, %v305_v34  ;;  %v323_v41 = vmul.f32 -0.01, %v203_v39 }
 0x11f   :  { %353 = vst.msk [vmem:[#allocation5 + $0x18] sm:$0xff] %vm349_vm1, %v336_v37  ;;  %v339_v42 = vadd.f32 %v323_v41, %v307_v40 }
 0x120   :  { %354 = vst.msk [vmem:[#allocation5 + $0x20] sm:$0xff] %vm349_vm1, %v337_v38 }
 0x121   :  { %356 = vst.msk [vmem:[#allocation5 + $0x30] sm:$0xff] %vm349_vm1, %v339_v42 }
 0x122   :  { %v183_v43 = vpop.f32.mrf.mxu3 }
 0x123   :  { %v322_v45 = vmul.f32 -0.01, %v183_v43 }
 0x124   :  { %v206_v47 = vpop.f32.mrf.mxu1 }
 0x125   :  { %v338_v46 = vadd.f32 %v322_v45, %v306_v44  ;;  %v324_v49 = vmul.f32 -0.01, %v206_v47 }
 0x127   :  { %355 = vst.msk [vmem:[#allocation5 + $0x28] sm:$0xff] %vm349_vm1, %v338_v46  ;;  %v340_v50 = vadd.f32 %v324_v49, %v308_v48 }
 0x129   :  { %357 = vst.msk [vmem:[#allocation5 + $0x38] sm:$0xff] %vm349_vm1, %v340_v50 }
 0x12a   :  { %v226_v51 = vpop.f32.mrf.mxu2 }
 0x12b   :  { %v325_v53 = vmul.f32 -0.01, %v226_v51 }
 0x12d   :  { %v341_v54 = vadd.f32 %v325_v53, %v309_v52  ;;  %v272_v55 = vpop.f32.mrf.mxu1 }
 0x12e   :  { %v329_v57 = vmul.f32 -0.01, %v272_v55 }
 0x12f   :  { %358 = vst.msk [vmem:[#allocation5 + $0x40] sm:$0xff] %vm349_vm1, %v341_v54 }
 0x130   :  { %v345_v58 = vadd.f32 %v329_v57, %v313_v56 }
 0x132   :  { %v229_v59 = vpop.f32.mrf.mxu2  ;;  %v249_v61 = vpop.f32.mrf.mxu3  ;;  %362 = vst.msk [vmem:[#allocation5 + $0x60] sm:$0xff] %vm349_vm1, %v345_v58 }
 0x133   :  { %v326_v63 = vmul.f32 -0.01, %v229_v59  ;;  %v327_v0 = vmul.f32 -0.01, %v249_v61 }
 0x135   :  { %v342_v1 = vadd.f32 %v326_v63, %v310_v60  ;;  %v343_v2 = vadd.f32 %v327_v0, %v311_v62  ;;  %v275_v3 = vpop.f32.mrf.mxu1 }
 0x136   :  { %v330_v5 = vmul.f32 -0.01, %v275_v3 }
 0x137   :  { %359 = vst.msk [vmem:[#allocation5 + $0x48] sm:$0xff] %vm349_vm1, %v342_v1 }
 0x138   :  { %360 = vst.msk [vmem:[#allocation5 + $0x50] sm:$0xff] %vm349_vm1, %v343_v2  ;;  %v346_v6 = vadd.f32 %v330_v5, %v314_v4 }
 0x13a   :  { %v295_v7 = vpop.f32.mrf.mxu2  ;;  %v252_v9 = vpop.f32.mrf.mxu3  ;;  %363 = vst.msk [vmem:[#allocation5 + $0x68] sm:$0xff] %vm349_vm1, %v346_v6 }
 0x13b   :  { %v331_v11 = vmul.f32 -0.01, %v295_v7  ;;  %v328_v12 = vmul.f32 -0.01, %v252_v9 }
 0x13d   :  { %v347_v13 = vadd.f32 %v331_v11, %v315_v8  ;;  %v344_v14 = vadd.f32 %v328_v12, %v312_v10 }
 0x13f   :  { %364 = vst.msk [vmem:[#allocation5 + $0x70] sm:$0xff] %vm349_vm1, %v347_v13 }
 0x140   :  { %361 = vst.msk [vmem:[#allocation5 + $0x58] sm:$0xff] %vm349_vm1, %v344_v14 }
 0x142   :  { %v298_v15 = vpop.f32.mrf.mxu2 }
 0x143   :  { %v332_v17 = vmul.f32 -0.01, %v298_v15 }
 0x145   :  { %v348_v18 = vadd.f32 %v332_v17, %v316_v16 }
 0x147   :  { %365 = vst.msk [vmem:[#allocation5 + $0x78] sm:$0xff] %vm349_vm1, %v348_v18 }
 0x148   :  { %378 = dma.vmem_to_hbm [thread:$0]  %s371_s3, 2048, %s373_s18, [#allocation4], %s467_s20, %s467_s20, %s468_s21  }
 0x149   :  { %464 = dma.done.wait [#allocation4], 2048  }
 0x14a   :  { %465 = vsyncadd [#allocation4], 4294965248 }
 0x14b   :  { %383 = vsyncpa [#allocation3], 1 }
 0x14c   :  { %384 = vsyncpa [#allocation4], 1 }

</bundles_post_ra>
